<compile_context>
chip_gen: v7x
topology: tpu7x:2x2x1
jax: 0.10.0
libtpu: 0.0.40
codegen_flags: <defaults>
</compile_context>

<pallas_src>
import jax
import jax.numpy as jnp
import numpy as np
from jax import lax
from jax.experimental import pallas as pl
from jax.experimental.pallas import tpu as pltpu

# ---------------- configuration (small synthetic sizes) ----------------
N, CIN, H, W = 2, 4, 16, 16
HID, OUT = 32, 8
DILS = (2, 4, 6)                 # ASPP(dilation_rates=(2, 4, 6)) for the small test
HW = H * W
EPS = 1e-5
SLOPE = 0.01                     # nn.LeakyReLU default negative_slope

K_REAL = CIN + 3 * 9 * CIN       # 4 + 3*36 = 112 fused contraction depth
KPAD = ((K_REAL + 127) // 128) * 128   # pad K to 128 (MXU-native)
C4 = 4 * HID                     # 128 concatenated branch channels


# ---------------- Pallas kernel ----------------
def aspp_fused_kernel(xT_ref, wcatT_ref, mscale_ref, mshift_ref, wredT_ref,
                      pool_ref, rscale_ref, rshift_ref, o_ref):
    """Fused ASPP for one image (channel-major / transposed layout).

    xT_ref    : (KPAD, HW)  bf16   concat[x, im2col(d) for d in DILS], zero-padded K
    wcatT_ref : (C4, KPAD)  bf16   block-diagonal stack of [W1, Wd0, Wd1, Wd2]^T
    mscale/mshift : (C4, 1) f32    folded map_bn
    wredT_ref : (OUT, C4)   bf16   red_conv^T
    pool_ref  : (OUT, 1)    f32    precomputed global-pooling branch contribution
    rscale/rshift : (OUT, 1) f32   folded red_bn
    o_ref     : (OUT, HW)   f32    lane-dense output, directly NCHW-ordered
    """
    # All four map_convs in one MXU pass: (C4, KPAD) @ (KPAD, HW) -> (C4, HW) f32.
    z = jnp.dot(wcatT_ref[...], xT_ref[...], preferred_element_type=jnp.float32)
    # map_bn + leaky_relu, single lane-dense VPU pass.
    y = z * mscale_ref[...] + mshift_ref[...]
    y = jnp.where(y >= 0, y, SLOPE * y)
    # red_conv in one K=128 pass: (OUT, C4) @ (C4, HW) -> (OUT, HW).
    out = jnp.dot(wredT_ref[...], y.astype(jnp.bfloat16),
                  preferred_element_type=jnp.float32)
    # + pooled branch (broadcast over HW lanes), red_bn, leaky_relu.
    out = out + pool_ref[...]
    out = out * rscale_ref[...] + rshift_ref[...]
    o_ref[...] = jnp.where(out >= 0, out, SLOPE * out)


# ---------------- JAX glue ----------------
def _build_xT(x_nchw):
    """Channel-major fused operand (N, KPAD, HW) in bf16.

    Rows: [x (CIN) | im2col(d0) (9*CIN) | im2col(d1) | im2col(d2) | zero pad].
    Built directly from NCHW so no host-side transpose is needed; tap ordering
    (ki, kj, c) matches the HWIO weight reshape.
    """
    n, c, h, w = x_nchw.shape
    hw = h * w
    parts = [x_nchw.reshape(n, c, hw)]
    for d in DILS:
        xp = jnp.pad(x_nchw, ((0, 0), (0, 0), (d, d), (d, d)))
        taps = [xp[:, :, ki * d:ki * d + h, kj * d:kj * d + w]
                for ki in range(3) for kj in range(3)]
        parts.append(jnp.stack(taps, axis=1).reshape(n, 9 * c, hw))
    xT = jnp.concatenate(parts, axis=1)                       # (n, K_REAL, hw)
    xT = jnp.pad(xT, ((0, 0), (0, KPAD - K_REAL), (0, 0)))    # zero-pad K to 128
    return xT.astype(jnp.bfloat16)


def _build_fused_weight(p):
    """Block-diagonal (KPAD, C4) stack of [W1 | Wd0 | Wd1 | Wd2], transposed to (C4, KPAD)."""
    w = jnp.zeros((KPAD, C4), jnp.float32)
    w = w.at[:CIN, :HID].set(p["W1"])
    row = CIN
    for i in range(3):
        w = w.at[row:row + 9 * CIN, (i + 1) * HID:(i + 2) * HID].set(p["Wd_mat"][i])
        row += 9 * CIN
    return w.T.astype(jnp.bfloat16)


@jax.jit
def aspp_forward(x_nchw, p):
    n, cin, h, w = x_nchw.shape
    hw = h * w
    x = x_nchw.astype(jnp.float32)

    xT = _build_xT(x)                                          # (n, KPAD, hw) bf16
    wcatT = _build_fused_weight(p)                             # (C4, KPAD)    bf16
    wredT = p["Wred"].T.astype(jnp.bfloat16)                   # (OUT, C4)     bf16

    # Global-pooling branch: a 2x4 mean + two tiny matmuls, precomputed in plain
    # JAX (trivial work) so a second pallas_call is not needed.
    hi = lax.Precision.HIGHEST
    pool = x.reshape(n, cin, hw).mean(axis=-1)                 # (n, CIN)
    pz = jnp.dot(pool, p["Wgp"], precision=hi)                 # (n, HID)
    pz = pz * p["gscale"] + p["gshift"]
    pz = jnp.where(pz >= 0, pz, SLOPE * pz)
    pool_col = jnp.dot(pz, p["Wpr"], precision=hi)[:, :, None]  # (n, OUT, 1)

    mscale = p["mscale"].reshape(C4, 1)
    mshift = p["mshift"].reshape(C4, 1)
    rscale = p["rscale"].reshape(OUT, 1)
    rshift = p["rshift"].reshape(OUT, 1)

    out = pl.pallas_call(
        aspp_fused_kernel,
        out_shape=jax.ShapeDtypeStruct((n, OUT, hw), jnp.float32),
        grid=(n,),
        in_specs=[
            pl.BlockSpec((None, KPAD, hw), lambda b: (b, 0, 0)),   # xT, per image
            pl.BlockSpec((C4, KPAD), lambda b: (0, 0)),            # fused conv weight
            pl.BlockSpec((C4, 1), lambda b: (0, 0)),               # map_bn scale
            pl.BlockSpec((C4, 1), lambda b: (0, 0)),               # map_bn shift
            pl.BlockSpec((OUT, C4), lambda b: (0, 0)),             # red_conv^T
            pl.BlockSpec((None, OUT, 1), lambda b: (b, 0, 0)),     # pooled branch
            pl.BlockSpec((OUT, 1), lambda b: (0, 0)),              # red_bn scale
            pl.BlockSpec((OUT, 1), lambda b: (0, 0)),              # red_bn shift
        ],
        out_specs=pl.BlockSpec((None, OUT, hw), lambda b: (b, 0, 0)),
        compiler_params=pltpu.CompilerParams(dimension_semantics=("parallel",)),
    )(xT, wcatT, mscale, mshift, wredT, pool_col, rscale, rshift)

    # (n, OUT, hw) is already channel-major -> reshape straight to NCHW.
    return out.reshape(n, OUT, h, w)


# ---------------- deterministic parameter initialization ----------------
def _bn_fold(key, c):
    kg, kb, km, kv = jax.random.split(key, 4)
    gamma = 1.0 + 0.1 * jax.random.normal(kg, (c,), jnp.float32)
    beta = 0.1 * jax.random.normal(kb, (c,), jnp.float32)
    mean = 0.1 * jax.random.normal(km, (c,), jnp.float32)
    var = jax.random.uniform(kv, (c,), jnp.float32, 0.5, 1.5)
    scale = gamma / jnp.sqrt(var + EPS)
    shift = beta - mean * scale
    return scale, shift


def init_params(key):
    ks = jax.random.split(key, 10)
    p = {}
    p["W1"] = 0.2 * jax.random.normal(ks[0], (CIN, HID), jnp.float32)          # 1x1 conv (C, O)
    Wd = [0.2 * jax.random.normal(ks[1 + i], (3, 3, CIN, HID), jnp.float32)    # HWIO
          for i in range(3)]
    p["Wd_hwio"] = Wd
    p["Wd_mat"] = [w.reshape(9 * CIN, HID) for w in Wd]                        # (ki,kj,c) ordering
    p["mscale"], p["mshift"] = _bn_fold(ks[4], C4)                             # map_bn (eval, folded)
    p["Wgp"] = 0.2 * jax.random.normal(ks[5], (CIN, HID), jnp.float32)         # global_pooling_conv
    p["gscale"], p["gshift"] = _bn_fold(ks[6], HID)                            # global_pooling_bn
    p["Wred"] = 0.2 * jax.random.normal(ks[7], (C4, OUT), jnp.float32)         # red_conv (C, O)
    p["Wpr"] = 0.2 * jax.random.normal(ks[8], (HID, OUT), jnp.float32)         # pool_red_conv
    p["rscale"], p["rshift"] = _bn_fold(ks[9], OUT)                            # red_bn
    return p


# ---------------- pure-JAX reference (f32, PyTorch semantics) ----------------
def reference_aspp(x_nchw, p):
    hi = lax.Precision.HIGHEST
    x = jnp.transpose(x_nchw, (0, 2, 3, 1)).astype(jnp.float32)
    branches = [jnp.einsum("nhwc,co->nhwo", x, p["W1"], precision=hi)]
    for d, wd in zip(DILS, p["Wd_hwio"]):
        branches.append(lax.conv_general_dilated(
            x, wd, window_strides=(1, 1), padding=[(d, d), (d, d)],
            rhs_dilation=(d, d), dimension_numbers=("NHWC", "HWIO", "NHWC"),
            precision=hi))
    cat = jnp.concatenate(branches, axis=-1)
    cat = cat * p["mscale"] + p["mshift"]
    cat = jnp.where(cat >= 0, cat, SLOPE * cat)
    out = jnp.einsum("nhwc,co->nhwo", cat, p["Wred"], precision=hi)
    pool = x.mean(axis=(1, 2))                                   # (N, CIN)
    pz = jnp.dot(pool, p["Wgp"], precision=hi)
    pz = pz * p["gscale"] + p["gshift"]
    pz = jnp.where(pz >= 0, pz, SLOPE * pz)
    pz = jnp.dot(pz, p["Wpr"], precision=hi)
    out = out + pz[:, None, None, :]
    out = out * p["rscale"] + p["rshift"]
    out = jnp.where(out >= 0, out, SLOPE * out)
    return jnp.transpose(out, (0, 3, 1, 2))


# ---------------- main ----------------
if __name__ == "__main__":
    key = jax.random.PRNGKey(0)
    kx, kp = jax.random.split(key)
    x = jax.random.normal(kx, (N, CIN, H, W), jnp.float32)   # NCHW input like PyTorch
    params = init_params(kp)

    out = jax.block_until_ready(aspp_forward(x, params))
    assert out.shape == (N, OUT, H, W), out.shape

    ref = jax.block_until_ready(reference_aspp(x, params))
    # Kernel uses bf16 MXU operands (f32 accumulation) vs the f32 HIGHEST-precision
    # reference, so the tolerance is widened accordingly.
    np.testing.assert_allclose(np.asarray(out), np.asarray(ref), rtol=5e-2, atol=5e-2)

    print("KERNEL_OK")
</pallas_src>

<mosaic_0001>
module attributes {stable_mosaic.version = 11 : i64} {
  func.func @aspp_fused_kernel(%arg0: i32, %arg1: memref<1x128x256xbf16, #tpu.memory_space<vmem>>, %arg2: memref<128x128xbf16, #tpu.memory_space<vmem>>, %arg3: memref<128x1xf32, #tpu.memory_space<vmem>>, %arg4: memref<128x1xf32, #tpu.memory_space<vmem>>, %arg5: memref<8x128xbf16, #tpu.memory_space<vmem>>, %arg6: memref<1x8x1xf32, #tpu.memory_space<vmem>>, %arg7: memref<8x1xf32, #tpu.memory_space<vmem>>, %arg8: memref<8x1xf32, #tpu.memory_space<vmem>>, %arg9: memref<1x8x256xf32, #tpu.memory_space<vmem>>) attributes {dimension_semantics = [#tpu.dimension_semantics<parallel>], iteration_bounds = array<i64: 2>, scalar_prefetch = 0 : i64, scratch_operands = 0 : i64, tpu.core_type = #tpu.core_type<tc>, window_params = [{transform_indices = @transform_0, window_bounds = array<i64: 1, 128, 256>}, {pipeline_mode = #tpu.pipeline_mode<synchronous>, transform_indices = @transform_1, window_bounds = array<i64: 128, 128>}, {pipeline_mode = #tpu.pipeline_mode<synchronous>, transform_indices = @transform_2, window_bounds = array<i64: 128, 1>}, {pipeline_mode = #tpu.pipeline_mode<synchronous>, transform_indices = @transform_3, window_bounds = array<i64: 128, 1>}, {pipeline_mode = #tpu.pipeline_mode<synchronous>, transform_indices = @transform_4, window_bounds = array<i64: 8, 128>}, {transform_indices = @transform_5, window_bounds = array<i64: 1, 8, 1>}, {pipeline_mode = #tpu.pipeline_mode<synchronous>, transform_indices = @transform_6, window_bounds = array<i64: 8, 1>}, {pipeline_mode = #tpu.pipeline_mode<synchronous>, transform_indices = @transform_7, window_bounds = array<i64: 8, 1>}, {transform_indices = @transform_8, window_bounds = array<i64: 1, 8, 256>}]} {
    %c0 = arith.constant 0 : index
    %c0_0 = arith.constant 0 : index
    %0 = vector.load %arg2[%c0, %c0_0] : memref<128x128xbf16, #tpu.memory_space<vmem>>, vector<128x128xbf16>
    %c0_1 = arith.constant 0 : index
    %c0_2 = arith.constant 0 : index
    %c0_3 = arith.constant 0 : index
    %1 = vector.load %arg1[%c0_1, %c0_2, %c0_3] : memref<1x128x256xbf16, #tpu.memory_space<vmem>>, vector<1x128x256xbf16>
    %2 = vector.shape_cast %1 : vector<1x128x256xbf16> to vector<128x256xbf16>
    %cst = arith.constant dense<0.000000e+00> : vector<128x256xf32>
    %3 = tpu.matmul %0, %2, %cst {dimension_numbers = #tpu.dot_dimension_numbers<[1], [0], [0], [1], [0, 0, 1, 1], [], []>} : vector<128x128xbf16>, vector<128x256xbf16>, vector<128x256xf32> -> vector<128x256xf32>
    %c0_4 = arith.constant 0 : index
    %c0_5 = arith.constant 0 : index
    %4 = vector.load %arg3[%c0_4, %c0_5] : memref<128x1xf32, #tpu.memory_space<vmem>>, vector<128x1xf32>
    %5 = vector.broadcast %4 : vector<128x1xf32> to vector<128x256xf32>
    %6 = arith.mulf %3, %5 : vector<128x256xf32>
    %c0_6 = arith.constant 0 : index
    %c0_7 = arith.constant 0 : index
    %7 = vector.load %arg4[%c0_6, %c0_7] : memref<128x1xf32, #tpu.memory_space<vmem>>, vector<128x1xf32>
    %8 = vector.broadcast %7 : vector<128x1xf32> to vector<128x256xf32>
    %9 = arith.addf %6, %8 : vector<128x256xf32>
    %cst_8 = arith.constant 0.000000e+00 : f32
    %10 = vector.broadcast %cst_8 : f32 to vector<128x256xf32>
    %11 = arith.cmpf oge, %9, %10 : vector<128x256xf32>
    %cst_9 = arith.constant 0.00999999977 : f32
    %12 = vector.broadcast %cst_9 : f32 to vector<128x256xf32>
    %13 = arith.mulf %12, %9 : vector<128x256xf32>
    %14 = arith.select %11, %9, %13 : vector<128x256xi1>, vector<128x256xf32>
    %c0_10 = arith.constant 0 : index
    %c0_11 = arith.constant 0 : index
    %15 = vector.load %arg5[%c0_10, %c0_11] : memref<8x128xbf16, #tpu.memory_space<vmem>>, vector<8x128xbf16>
    %16 = arith.truncf %14 : vector<128x256xf32> to vector<128x256xbf16>
    %cst_12 = arith.constant dense<0.000000e+00> : vector<8x256xf32>
    %17 = tpu.matmul %15, %16, %cst_12 {dimension_numbers = #tpu.dot_dimension_numbers<[1], [0], [0], [1], [0, 0, 1, 1], [], []>} : vector<8x128xbf16>, vector<128x256xbf16>, vector<8x256xf32> -> vector<8x256xf32>
    %c0_13 = arith.constant 0 : index
    %c0_14 = arith.constant 0 : index
    %c0_15 = arith.constant 0 : index
    %18 = vector.load %arg6[%c0_13, %c0_14, %c0_15] : memref<1x8x1xf32, #tpu.memory_space<vmem>>, vector<1x8x1xf32>
    %19 = vector.shape_cast %18 : vector<1x8x1xf32> to vector<8x1xf32>
    %20 = vector.broadcast %19 : vector<8x1xf32> to vector<8x256xf32>
    %21 = arith.addf %17, %20 : vector<8x256xf32>
    %c0_16 = arith.constant 0 : index
    %c0_17 = arith.constant 0 : index
    %22 = vector.load %arg7[%c0_16, %c0_17] : memref<8x1xf32, #tpu.memory_space<vmem>>, vector<8x1xf32>
    %23 = vector.broadcast %22 : vector<8x1xf32> to vector<8x256xf32>
    %24 = arith.mulf %21, %23 : vector<8x256xf32>
    %c0_18 = arith.constant 0 : index
    %c0_19 = arith.constant 0 : index
    %25 = vector.load %arg8[%c0_18, %c0_19] : memref<8x1xf32, #tpu.memory_space<vmem>>, vector<8x1xf32>
    %26 = vector.broadcast %25 : vector<8x1xf32> to vector<8x256xf32>
    %27 = arith.addf %24, %26 : vector<8x256xf32>
    %cst_20 = arith.constant 0.000000e+00 : f32
    %28 = vector.broadcast %cst_20 : f32 to vector<8x256xf32>
    %29 = arith.cmpf oge, %27, %28 : vector<8x256xf32>
    %cst_21 = arith.constant 0.00999999977 : f32
    %30 = vector.broadcast %cst_21 : f32 to vector<8x256xf32>
    %31 = arith.mulf %30, %27 : vector<8x256xf32>
    %32 = arith.select %29, %27, %31 : vector<8x256xi1>, vector<8x256xf32>
    %c0_22 = arith.constant 0 : index
    %c0_23 = arith.constant 0 : index
    %c0_24 = arith.constant 0 : index
    %33 = vector.load %arg9[%c0_22, %c0_23, %c0_24] : memref<1x8x256xf32, #tpu.memory_space<vmem>>, vector<1x8x256xf32>
    %34 = vector.shape_cast %33 : vector<1x8x256xf32> to vector<8x256xf32>
    %35 = vector.shape_cast %32 : vector<8x256xf32> to vector<1x8x256xf32>
    tpu.vector_store %arg9[%c0_22, %c0_23, %c0_24], %35 {strides = array<i32>} : memref<1x8x256xf32, #tpu.memory_space<vmem>>, vector<1x8x256xf32>,
    return
  }
  func.func @transform_0(%arg0: i32) -> (i32, i32, i32) {
    %c0_i32 = arith.constant 0 : i32
    %c0_i32_0 = arith.constant 0 : i32
    %c0_i32_1 = arith.constant 0 : i32
    return %arg0, %c0_i32, %c0_i32_0 : i32, i32, i32
  }
  func.func @transform_1(%arg0: i32) -> (i32, i32) {
    %c0_i32 = arith.constant 0 : i32
    %c0_i32_0 = arith.constant 0 : i32
    %c0_i32_1 = arith.constant 0 : i32
    return %c0_i32, %c0_i32_0 : i32, i32
  }
  func.func @transform_2(%arg0: i32) -> (i32, i32) {
    %c0_i32 = arith.constant 0 : i32
    %c0_i32_0 = arith.constant 0 : i32
    %c0_i32_1 = arith.constant 0 : i32
    return %c0_i32, %c0_i32_0 : i32, i32
  }
  func.func @transform_3(%arg0: i32) -> (i32, i32) {
    %c0_i32 = arith.constant 0 : i32
    %c0_i32_0 = arith.constant 0 : i32
    %c0_i32_1 = arith.constant 0 : i32
    return %c0_i32, %c0_i32_0 : i32, i32
  }
  func.func @transform_4(%arg0: i32) -> (i32, i32) {
    %c0_i32 = arith.constant 0 : i32
    %c0_i32_0 = arith.constant 0 : i32
    %c0_i32_1 = arith.constant 0 : i32
    return %c0_i32, %c0_i32_0 : i32, i32
  }
  func.func @transform_5(%arg0: i32) -> (i32, i32, i32) {
    %c0_i32 = arith.constant 0 : i32
    %c0_i32_0 = arith.constant 0 : i32
    %c0_i32_1 = arith.constant 0 : i32
    return %arg0, %c0_i32, %c0_i32_0 : i32, i32, i32
  }
  func.func @transform_6(%arg0: i32) -> (i32, i32) {
    %c0_i32 = arith.constant 0 : i32
    %c0_i32_0 = arith.constant 0 : i32
    %c0_i32_1 = arith.constant 0 : i32
    return %c0_i32, %c0_i32_0 : i32, i32
  }
  func.func @transform_7(%arg0: i32) -> (i32, i32) {
    %c0_i32 = arith.constant 0 : i32
    %c0_i32_0 = arith.constant 0 : i32
    %c0_i32_1 = arith.constant 0 : i32
    return %c0_i32, %c0_i32_0 : i32, i32
  }
  func.func @transform_8(%arg0: i32) -> (i32, i32, i32) {
    %c0_i32 = arith.constant 0 : i32
    %c0_i32_0 = arith.constant 0 : i32
    %c0_i32_1 = arith.constant 0 : i32
    return %arg0, %c0_i32, %c0_i32_0 : i32, i32, i32
  }
}

</mosaic_0001>

<bundles_post_ra>
// kernel: aspp_forward.1
= control target key start
LH: loop header
LB: loop body
LE: loop exit
PB: predicated region body
PF: predicated region fallthrough
CT: control target
= control target key end

     0   :  { %s1239_s27 = smov 0   ;;  %s1462_s0 = inlined_call_operand.vmem [shape: bf16[2,128,256], index: 0, kind: input, shape index: {}]   ;;  %s1463_s1 = inlined_call_operand.vmem [shape: bf16[128,128], index: 1, kind: input, shape index: {}]   ;;  %s1464_s2 = inlined_call_operand.vmem [shape: f32[128,1], index: 2, kind: input, shape index: {}]   ;;  %s1465_s3 = inlined_call_operand.vmem [shape: f32[128,1], index: 3, kind: input, shape index: {}]   ;;  %s1466_s4 = inlined_call_operand.vmem [shape: bf16[8,128], index: 4, kind: input, shape index: {}]   ;;  %s1467_s5 = inlined_call_operand.vmem [shape: f32[2,8,1], index: 5, kind: input, shape index: {}]   ;;  %s1468_s6 = inlined_call_operand.vmem [shape: f32[8,1], index: 6, kind: input, shape index: {}]   ;;  %s1469_s7 = inlined_call_operand.vmem [shape: f32[8,1], index: 7, kind: input, shape index: {}]   ;;  %s1470_s8 = inlined_call_operand.vmem [shape: f32[2,8,256], index: 8, kind: output, shape index: {}]  }
   0x1 LB: > { %s1104_s28 = sadd.s32 4294967295, %s1191_s27   ;;  %p1108_p0 = scmp.ge.s32.totalorder %s1191_s27, 1  ;;  %s1191_s27 = sphi %s1239_s27, %s18_s27  }
   0x2   : > { %p271_p1 = scmp.lt.s32.totalorder %s1191_s27, 3 }
   0x4   : > { %p272_p2 = pnand %p1108_p0, %p271_p1 }
   0x5   : > { %p309_p3 = scmp.lt.s32.totalorder (!%p272_p2), %s1104_s28, 1  ;;  %v1193_v0 = vmov (!%p272_p2), 0   ;;  %v597_v1 = vld [vmem:[%s1464_s2] sm:$0xff] (!%p272_p2)  ;;  %v598_v3 = vld [vmem:[%s1464_s2 + $0x8] sm:$0xff] (!%p272_p2)  ;;  %v599_v9 = vld [vmem:[%s1464_s2 + $0x10] sm:$0xff] (!%p272_p2) }
   0x6   : > { %275 = sbr.rel (%p272_p2) target bundleno = 556 (0x22c), region = 52  ;;  %516 = vmatprep.mubr.bf16.mxu0 (!%p272_p2), %v1193_v0  ;;  %1151 = vset.pattern.permute.xlu0 (!%p272_p2), %v1193_v0  ;;  %v725_v2 = vld [vmem:[%s1465_s3] sm:$0xff] (!%p272_p2)  ;;  %v726_v4 = vld [vmem:[%s1465_s3 + $0x8] sm:$0xff] (!%p272_p2)  ;;  %v600_v14 = vld [vmem:[%s1464_s2 + $0x18] sm:$0xff] (!%p272_p2) }
   0x7   : > { %1152 = vset.pattern.permute.xlu1 (!%p272_p2), %v1193_v0  ;;  %1004 = vmatprep.mubr.bf16.mxu1 (!%p272_p2), %v1193_v0  ;;  %v727_v15 = vld [vmem:[%s1465_s3 + $0x10] sm:$0xff] (!%p272_p2)  ;;  %v728_v17 = vld [vmem:[%s1465_s3 + $0x18] sm:$0xff] (!%p272_p2)  ;;  %v601_v18 = vld [vmem:[%s1464_s2 + $0x20] sm:$0xff] (!%p272_p2) }
   0x8   : > { %615 = vperm.xlu0 (!%p272_p2), %1151, %v597_v1   ;;  %743 = vperm.xlu1 (!%p272_p2), %1152, %v725_v2   ;;  %v602_v21 = vld [vmem:[%s1464_s2 + $0x28] sm:$0xff] (!%p272_p2)  ;;  %v729_v22 = vld [vmem:[%s1465_s3 + $0x20] sm:$0xff] (!%p272_p2)  ;;  %v603_v26 = vld [vmem:[%s1464_s2 + $0x30] sm:$0xff] (!%p272_p2) }
   0x9   : > { %v730_v25 = vld [vmem:[%s1465_s3 + $0x28] sm:$0xff] (!%p272_p2)  ;;  %v604_v29 = vld [vmem:[%s1464_s2 + $0x38] sm:$0xff] (!%p272_p2)  ;;  %v731_v30 = vld [vmem:[%s1465_s3 + $0x30] sm:$0xff] (!%p272_p2) }
   0xa   : > { %v732_v32 = vld [vmem:[%s1465_s3 + $0x38] sm:$0xff] (!%p272_p2)  ;;  %v605_v33 = vld [vmem:[%s1464_s2 + $0x40] sm:$0xff] (!%p272_p2)  ;;  %v606_v35 = vld [vmem:[%s1464_s2 + $0x48] sm:$0xff] (!%p272_p2) }
   0xb   : > { %v1177_v34 = vld [vmem:[%s1463_s1] sm:$0xff] (!%p272_p2)   ;;  %v734_v37 = vld [vmem:[%s1465_s3 + $0x48] sm:$0xff] (!%p272_p2)  ;;  %v607_v38 = vld [vmem:[%s1464_s2 + $0x50] sm:$0xff] (!%p272_p2) }
   0xc   : > { %620 = vperm.xlu0 (!%p272_p2), %1151, %v598_v3   ;;  %748 = vperm.xlu1 (!%p272_p2), %1152, %v726_v4   ;;  %v733_v36 = vld [vmem:[%s1465_s3 + $0x40] sm:$0xff] (!%p272_p2)  ;;  %v1178_v39 = vld [vmem:[%s1463_s1 + $0x8] sm:$0xff] (!%p272_p2)   ;;  %v608_v40 = vld [vmem:[%s1464_s2 + $0x58] sm:$0xff] (!%p272_p2) }
   0xd   : > { %s1472_s28 = smov (!%p309_p3, %s1104_s28), 1  ;;  %v735_v41 = vld [vmem:[%s1465_s3 + $0x50] sm:$0xff]  ;;  %v736_v42 = vld [vmem:[%s1465_s3 + $0x58] sm:$0xff]  ;;  %v609_v43 = vld [vmem:[%s1464_s2 + $0x60] sm:$0xff] }
   0xe   : > { %s1140_s11 = sshll.u32 %s1472_s28, 7  ;;  %v1179_v44 = vld [vmem:[%s1463_s1 + $0x10] sm:$0xff]   ;;  %v610_v45 = vld [vmem:[%s1464_s2 + $0x68] sm:$0xff]  ;;  %v737_v46 = vld [vmem:[%s1465_s3 + $0x60] sm:$0xff]  ;;  %s1111_s18 = sshll.u32 %s1472_s28, 3 }
   0xf   : > { %s1263_s14 = scalar_lea.vmem %s1462_s0, %s1140_s11  ;;  %v738_v47 = vld [vmem:[%s1465_s3 + $0x68] sm:$0xff]  ;;  %v611_v48 = vld [vmem:[%s1464_s2 + $0x70] sm:$0xff]  ;;  %v1180_v49 = vld [vmem:[%s1463_s1 + $0x18] sm:$0xff]   ;;  %s317_s25 = scalar_lea.vmem %s1467_s5, %s1111_s18 }
  0x10   : > { %v1153_v5 = vld [vmem:[%s1263_s14 + $0x4] ss:$8 sps:$4 sm:$0xff]   ;;  %v1155_v6 = vld [vmem:[%s1263_s14] ss:$8 sps:$4 sm:$0xff]   ;;  %v1156_v7 = vld [vmem:[%s1263_s14 + $0x14] ss:$8 sps:$4 sm:$0xff]   ;;  %625 = vperm.xlu0 %1151, %v599_v9   ;;  %630 = vperm.xlu1 %1152, %v600_v14  }
  0x11   : > { %484 = vmatprep.subr.bf16.mxu0 %v1153_v5  ;;  %v1158_v8 = vld [vmem:[%s1263_s14 + $0x10] ss:$8 sps:$4 sm:$0xff]   ;;  %v1159_v10 = vld [vmem:[%s1263_s14 + $0x24] ss:$8 sps:$4 sm:$0xff]   ;;  %v1161_v11 = vld [vmem:[%s1263_s14 + $0x20] ss:$8 sps:$4 sm:$0xff]  }
  0x12   : > { %485 = vmatpush1.bf16.msra.mxu0 %v1155_v6  ;;  %v1162_v12 = vld [vmem:[%s1263_s14 + $0x34] ss:$8 sps:$4 sm:$0xff]   ;;  %v1164_v13 = vld [vmem:[%s1263_s14 + $0x30] ss:$8 sps:$4 sm:$0xff]   ;;  %v1165_v16 = vld [vmem:[%s1263_s14 + $0x44] ss:$8 sps:$4 sm:$0xff]  }
  0x13   : > { %486 = vmatprep.subr.bf16.mxu0 %v1156_v7  ;;  %v1167_v19 = vld [vmem:[%s1263_s14 + $0x40] ss:$8 sps:$4 sm:$0xff]   ;;  %v1168_v20 = vld [vmem:[%s1263_s14 + $0x54] ss:$8 sps:$4 sm:$0xff]   ;;  %v1170_v23 = vld [vmem:[%s1263_s14 + $0x50] ss:$8 sps:$4 sm:$0xff]  }
  0x14   : > { %753 = vperm.xlu0 %1151, %v727_v15   ;;  %758 = vperm.xlu1 %1152, %v728_v17   ;;  %v1171_v24 = vld [vmem:[%s1263_s14 + $0x64] ss:$8 sps:$4 sm:$0xff]   ;;  %v1173_v27 = vld [vmem:[%s1263_s14 + $0x60] ss:$8 sps:$4 sm:$0xff]   ;;  %v1174_v28 = vld [vmem:[%s1263_s14 + $0x74] ss:$8 sps:$4 sm:$0xff]  }
  0x15   : > { %v1176_v31 = vld [vmem:[%s1263_s14 + $0x70] ss:$8 sps:$4 sm:$0xff]   ;;  %v966_v53 = vld [vmem:[%s317_s25] sm:$0xff]  ;;  %v1182_v57 = vld [vmem:[%s1463_s1 + $0x28] sm:$0xff]   ;;  %s1141_s22 = sshll.u32 %s1472_s28, 4 }
  0x16   : > { %487 = vmatpush1.bf16.msra.mxu0 %v1158_v8  ;;  %v612_v50 = vld [vmem:[%s1464_s2 + $0x78] sm:$0xff]  ;;  %v739_v51 = vld [vmem:[%s1465_s3 + $0x70] sm:$0xff]  ;;  %v1181_v54 = vld [vmem:[%s1463_s1 + $0x20] sm:$0xff]   ;;  %s322_s25 = scalar_lea.vmem %s1470_s8, %s1141_s22 }
  0x17   : > { %488 = vmatprep.subr.bf16.mxu0 %v1159_v10  ;;  %v740_v52 = vld [vmem:[%s1465_s3 + $0x78] sm:$0xff]  ;;  %v1013_v55 = vld [vmem:[%s1468_s6] sm:$0xff]  ;;  %v1183_v58 = vld [vmem:[%s1463_s1 + $0x30] sm:$0xff]  }
  0x18   : > { %635 = vperm.xlu0 %1151, %v601_v18   ;;  %640 = vperm.xlu1 %1152, %v602_v21   ;;  %v1021_v56 = vld [vmem:[%s1469_s7] sm:$0xff]  ;;  %v1184_v59 = vld [vmem:[%s1463_s1 + $0x38] sm:$0xff]  }
  0x1a   : > { %489 = vmatpush1.bf16.msra.mxu0 %v1161_v11 }
  0x1b   : > { %490 = vmatprep.subr.bf16.mxu0 %v1162_v12 }
  0x1c   : > { %763 = vperm.xlu0 %1151, %v729_v22   ;;  %768 = vperm.xlu1 %1152, %v730_v25  }
  0x1e   : > { %491 = vmatpush1.bf16.msra.mxu0 %v1164_v13 }
  0x1f   : > { %492 = vmatprep.subr.bf16.mxu0 %v1165_v16 }
  0x20   : > { %645 = vperm.xlu0 %1151, %v603_v26   ;;  %650 = vperm.xlu1 %1152, %v604_v29  }
  0x22   : > { %493 = vmatpush1.bf16.msra.mxu0 %v1167_v19 }
  0x23   : > { %494 = vmatprep.subr.bf16.mxu0 %v1168_v20 }
  0x24   : > { %773 = vperm.xlu0 %1151, %v731_v30   ;;  %778 = vperm.xlu1 %1152, %v732_v32  }
  0x26   : > { %495 = vmatpush1.bf16.msra.mxu0 %v1170_v23 }
  0x27   : > { %496 = vmatprep.subr.bf16.mxu0 %v1171_v24 }
  0x28   : > { %655 = vperm.xlu0 %1151, %v605_v33   ;;  %660 = vperm.xlu1 %1152, %v606_v35  }
  0x2a   : > { %497 = vmatpush1.bf16.msra.mxu0 %v1173_v27 }
  0x2b   : > { %498 = vmatprep.subr.bf16.mxu0 %v1174_v28 }
  0x2c   : > { %783 = vperm.xlu0 %1151, %v733_v36   ;;  %788 = vperm.xlu1 %1152, %v734_v37  }
  0x2e   : > { %499 = vmatpush1.bf16.msra.mxu0 %v1176_v31 }
  0x30   : > { %665 = vperm.xlu0 %1151, %v607_v38   ;;  %670 = vperm.xlu1 %1152, %v608_v40  }
  0x31   : > { %517 = vmatmul.mubr.bf16.vlgmr.msra.gmra.mrb[0].mxu0 %v1177_v34 }
  0x32   : > { %526 = vmatprep.mubr.bf16.mxu0 %v1193_v0 }
  0x34   : > { %793 = vperm.xlu0 %1151, %v735_v41   ;;  %798 = vperm.xlu1 %1152, %v736_v42  }
  0x38   : > { %675 = vperm.xlu0 %1151, %v609_v43   ;;  %680 = vperm.xlu1 %1152, %v610_v45  }
  0x39   : > { %527 = vmatmul.mubr.bf16.gmra.mrb[4].mxu0 %v1178_v39 }
  0x3a   : > { %536 = vmatprep.mubr.bf16.mxu0 %v1193_v0 }
  0x3c   : > { %803 = vperm.xlu0 %1151, %v737_v46   ;;  %808 = vperm.xlu1 %1152, %v738_v47  }
  0x40   : > { %685 = vperm.xlu0 %1151, %v611_v48   ;;  %690 = vperm.xlu1 %1152, %v612_v50  }
  0x41   : > { %537 = vmatmul.mubr.bf16.gmra.mrb[8].mxu0 %v1179_v44 }
  0x42   : > { %546 = vmatprep.mubr.bf16.mxu0 %v1193_v0 }
  0x44   : > { %813 = vperm.xlu0 %1151, %v739_v51   ;;  %818 = vperm.xlu1 %1152, %v740_v52  }
  0x48   : > { %969 = vperm.xlu0 %1151, %v966_v53   ;;  %1016 = vperm.xlu1 %1152, %v1013_v55  }
  0x49   : > { %547 = vmatmul.mubr.bf16.gmra.mrb[12].mxu0 %v1180_v49 }
  0x4a   : > { %556 = vmatprep.mubr.bf16.mxu0 %v1193_v0 }
  0x4c   : > { %1024 = vperm.xlu0 %1151, %v1021_v56  }
  0x51   : > { %557 = vmatmul.mubr.bf16.gmra.mrb[16].mxu0 %v1181_v54 }
  0x52   : > { %566 = vmatprep.mubr.bf16.mxu0 %v1193_v0 }
  0x59   : > { %567 = vmatmul.mubr.bf16.gmra.mrb[20].mxu0 %v1182_v57 }
  0x5a   : > { %576 = vmatprep.mubr.bf16.mxu0 %v1193_v0 }
  0x61   : > { %577 = vmatmul.mubr.bf16.gmra.mrb[24].mxu0 %v1183_v58 }
  0x62   : > { %586 = vmatprep.mubr.bf16.mxu0 %v1193_v0 }
  0x69   : > { %587 = vmatmul.mubr.bf16.gmra.mrb[28].mxu0 %v1184_v59 }
  0x87   : > { %v616_v60 = vpop.permute.xlu0 %615  ;;  %v744_v61 = vpop.permute.xlu1 %743 }
  0x8b   : > { %v621_v62 = vpop.permute.xlu0 %620  ;;  %v749_v63 = vpop.permute.xlu1 %748 }
  0x8f   : > { %v626_v1 = vpop.permute.xlu0 %625  ;;  %v631_v2 = vpop.permute.xlu1 %630 }
  0x93   : > { %v754_v3 = vpop.permute.xlu0 %753  ;;  %v759_v4 = vpop.permute.xlu1 %758 }
  0x97   : > { %v1412_v5 = vpop.permute.xlu0 %635  ;;  %v1414_v6 = vpop.permute.xlu1 %640 }
  0x9b   : > { %v1416_v7 = vpop.permute.xlu0 %763  ;;  %v1418_v0 = vpop.permute.xlu1 %768 }
  0x9f   : > { %v1420_v16 = vpop.permute.xlu0 %645  ;;  %v1422_v21 = vpop.permute.xlu1 %650 }
  0xa3   : > { %v1424_v31 = vpop.permute.xlu0 %773  ;;  %v1426_v41 = vpop.permute.xlu1 %778 }
  0xa7   : > { %v1428_v49 = vpop.permute.xlu0 %655  ;;  %v1431_v56 = vpop.permute.xlu1 %660 }
 0x104   : > { %v518_v8 = vpop.f32.mrb[0].mxu0 }
 0x105   : > { %v693_v9 = vmul.f32 %v616_v60, %v518_v8  ;;  %v520_v10 = vpop.f32.mrb[1].mxu0 }
 0x106   : > { %v694_v11 = vmul.f32 %v616_v60, %v520_v10  ;;  %v522_v12 = vpop.f32.mrb[2].mxu0  ;;  %v784_v10 = vpop.permute.xlu0 %783 }
 0x107   : > { %v821_v13 = vadd.f32 %v744_v61, %v693_v9  ;;  %v695_v14 = vmul.f32 %v621_v62, %v522_v12  ;;  %v524_v15 = vpop.f32.mrb[3].mxu0 }
 0x108   : > { %v822_v17 = vadd.f32 %v744_v61, %v694_v11  ;;  %v696_v18 = vmul.f32 %v621_v62, %v524_v15 }
 0x109   : > { %v823_v19 = vadd.f32 %v749_v63, %v695_v14  ;;  %v885_v20 = vmul.f32 0.01, %v821_v13  ;;  %vm853_vm0 = vcmp.ge.f32.partialorder %v821_v13, 0.0 }
 0x10a   : > { %v824_v22 = vadd.f32 %v749_v63, %v696_v18  ;;  %v886_v23 = vmul.f32 0.01, %v822_v17  ;;  %vm854_vm1 = vcmp.ge.f32.partialorder %v822_v17, 0.0 }
 0x10b   : > { %vm855_vm2 = vcmp.ge.f32.partialorder %v823_v19, 0.0  ;;  %v887_v24 = vmul.f32 0.01, %v823_v19  ;;  %v917_v29 = vsel %vm853_vm0, %v821_v13, %v885_v20  ;;  %v789_v13 = vpop.permute.xlu1 %788 }
 0x10c   : > { %v528_v25 = vpop.f32.mrb[4].mxu0  ;;  %vm856_vm3 = vcmp.ge.f32.partialorder %v824_v22, 0.0  ;;  %v888_v26 = vmul.f32 0.01, %v824_v22  ;;  %v918_v34 = vsel %vm854_vm1, %v822_v17, %v886_v23 }
 0x10d   : > { %v697_v27 = vmul.f32 %v626_v1, %v528_v25  ;;  %v530_v28 = vpop.f32.mrb[5].mxu0  ;;  %v919_v30 = vsel %vm855_vm2, %v823_v19, %v887_v24 }
 0x10e   : > { %v698_v32 = vmul.f32 %v626_v1, %v530_v28  ;;  %v532_v33 = vpop.f32.mrb[6].mxu0  ;;  %v920_v35 = vsel %vm856_vm3, %v824_v22, %v888_v26  ;;  %v950_v36 = vpack.c.bf16 %v919_v30, %v917_v29  ;;  %v666_v28 = vpop.permute.xlu0 %665 }
 0x10f   : > { %v825_v37 = vadd.f32 %v754_v3, %v697_v27  ;;  %v699_v38 = vmul.f32 %v631_v2, %v532_v33  ;;  %v534_v39 = vpop.f32.mrb[7].mxu0  ;;  %v951_v40 = vpack.c.bf16 %v920_v35, %v918_v34 }
 0x110   : > { %v826_v42 = vadd.f32 %v754_v3, %v698_v32  ;;  %v700_v43 = vmul.f32 %v631_v2, %v534_v39 }
 0x111   : > { %v889_v44 = vmul.f32 0.01, %v825_v37  ;;  %v827_v45 = vadd.f32 %v759_v4, %v699_v38  ;;  %972 = vmatprep.subr.bf16.mxu1 %v951_v40  ;;  %vm857_vm4 = vcmp.ge.f32.partialorder %v825_v37, 0.0 }
 0x112   : > { %v890_v46 = vmul.f32 0.01, %v826_v42  ;;  %v828_v47 = vadd.f32 %v759_v4, %v700_v43  ;;  %973 = vmatpush1.bf16.msra.mxu1 %v950_v36  ;;  %vm858_vm5 = vcmp.ge.f32.partialorder %v826_v42, 0.0 }
 0x113   : > { %vm859_vm6 = vcmp.ge.f32.partialorder %v827_v45, 0.0  ;;  %v891_v48 = vmul.f32 0.01, %v827_v45  ;;  %v921_v54 = vsel %vm857_vm4, %v825_v37, %v889_v44 }
 0x114   : > { %vm860_vm7 = vcmp.ge.f32.partialorder %v828_v47, 0.0  ;;  %v892_v50 = vmul.f32 0.01, %v828_v47  ;;  %v538_v51 = vpop.f32.mrb[8].mxu0  ;;  %v922_v59 = vsel %vm858_vm5, %v826_v42, %v890_v46  ;;  %v794_v42 = vpop.permute.xlu0 %793 }
 0x115   : > { %v701_v52 = vmul.f32 %v1412_v5, %v538_v51  ;;  %v540_v53 = vpop.f32.mrb[9].mxu0  ;;  %v923_v55 = vsel %vm859_vm6, %v827_v45, %v891_v48 }
 0x116   : > { %v702_v57 = vmul.f32 %v1412_v5, %v540_v53  ;;  %v542_v58 = vpop.f32.mrb[10].mxu0  ;;  %v924_v60 = vsel %vm860_vm7, %v828_v47, %v892_v50  ;;  %v952_v61 = vpack.c.bf16 %v923_v55, %v921_v54 }
 0x117   : > { %v829_v62 = vadd.f32 %v1416_v7, %v701_v52  ;;  %v703_v63 = vmul.f32 %v1414_v6, %v542_v58  ;;  %v544_v1 = vpop.f32.mrb[11].mxu0  ;;  %v953_v2 = vpack.c.bf16 %v924_v60, %v922_v59 }
 0x118   : > { %v830_v3 = vadd.f32 %v1416_v7, %v702_v57  ;;  %v704_v4 = vmul.f32 %v1414_v6, %v544_v1  ;;  %v676_v60 = vpop.permute.xlu0 %675 }
 0x119   : > { %v893_v8 = vmul.f32 0.01, %v829_v62  ;;  %v831_v9 = vadd.f32 %v1418_v0, %v703_v63  ;;  %974 = vmatprep.subr.bf16.mxu1 %v953_v2  ;;  %vm861_vm8 = vcmp.ge.f32.partialorder %v829_v62, 0.0 }
 0x11a   : > { %v894_v5 = vmul.f32 0.01, %v830_v3  ;;  %v832_v11 = vadd.f32 %v1418_v0, %v704_v4  ;;  %975 = vmatpush1.bf16.msra.mxu1 %v952_v61  ;;  %vm862_vm9 = vcmp.ge.f32.partialorder %v830_v3, 0.0 }
 0x11b   : > { %vm863_vm10 = vcmp.ge.f32.partialorder %v831_v9, 0.0  ;;  %v895_v12 = vmul.f32 0.01, %v831_v9  ;;  %v925_v17 = vsel %vm861_vm8, %v829_v62, %v893_v8 }
 0x11c   : > { %vm864_vm11 = vcmp.ge.f32.partialorder %v832_v11, 0.0  ;;  %v896_v14 = vmul.f32 0.01, %v832_v11  ;;  %v548_v15 = vpop.f32.mrb[12].mxu0  ;;  %v926_v22 = vsel %vm862_vm9, %v830_v3, %v894_v5 }
 0x11d   : > { %v705_v7 = vmul.f32 %v1420_v16, %v548_v15  ;;  %v550_v6 = vpop.f32.mrb[13].mxu0  ;;  %v927_v18 = vsel %vm863_vm10, %v831_v9, %v895_v12 }
 0x11e   : > { %v706_v19 = vmul.f32 %v1420_v16, %v550_v6  ;;  %v552_v20 = vpop.f32.mrb[14].mxu0  ;;  %v928_v23 = vsel %vm864_vm11, %v832_v11, %v896_v14  ;;  %v954_v24 = vpack.c.bf16 %v927_v18, %v925_v17  ;;  %v671_v16 = vpop.permute.xlu1 %670 }
 0x11f   : > { %v833_v0 = vadd.f32 %v1424_v31, %v705_v7  ;;  %v707_v25 = vmul.f32 %v1422_v21, %v552_v20  ;;  %v554_v26 = vpop.f32.mrb[15].mxu0  ;;  %v955_v27 = vpack.c.bf16 %v928_v23, %v926_v22  ;;  %v804_v18 = vpop.permute.xlu0 %803 }
 0x120   : > { %v834_v29 = vadd.f32 %v1424_v31, %v706_v19  ;;  %v708_v30 = vmul.f32 %v1422_v21, %v554_v26 }
 0x121   : > { %v897_v32 = vmul.f32 0.01, %v833_v0  ;;  %v835_v33 = vadd.f32 %v1426_v41, %v707_v25  ;;  %976 = vmatprep.subr.bf16.mxu1 %v955_v27  ;;  %vm865_vm12 = vcmp.ge.f32.partialorder %v833_v0, 0.0 }
 0x122   : > { %v898_v34 = vmul.f32 0.01, %v834_v29  ;;  %v836_v35 = vadd.f32 %v1426_v41, %v708_v30  ;;  %977 = vmatpush1.bf16.msra.mxu1 %v954_v24  ;;  %vm866_vm13 = vcmp.ge.f32.partialorder %v834_v29, 0.0  ;;  %v799_v52 = vpop.permute.xlu1 %798 }
 0x123   : > { %vm867_vm14 = vcmp.ge.f32.partialorder %v835_v33, 0.0  ;;  %v899_v36 = vmul.f32 0.01, %v835_v33  ;;  %v929_v21 = vsel %vm865_vm12, %v833_v0, %v897_v32 }
 0x124   : > { %vm868_vm15 = vcmp.ge.f32.partialorder %v836_v35, 0.0  ;;  %v900_v37 = vmul.f32 0.01, %v836_v35  ;;  %v558_v38 = vpop.f32.mrb[16].mxu0  ;;  %v930_v45 = vsel %vm866_vm13, %v834_v29, %v898_v34 }
 0x125   : > { %v709_v31 = vmul.f32 %v1428_v49, %v558_v38  ;;  %v560_v39 = vpop.f32.mrb[17].mxu0  ;;  %v931_v40 = vsel %vm867_vm14, %v835_v33, %v899_v36  ;;  %v686_v38 = vpop.permute.xlu0 %685 }
 0x126   : > { %v710_v43 = vmul.f32 %v1428_v49, %v560_v39  ;;  %v562_v44 = vpop.f32.mrb[18].mxu0  ;;  %v932_v46 = vsel %vm868_vm15, %v836_v35, %v900_v37  ;;  %v956_v47 = vpack.c.bf16 %v931_v40, %v929_v21  ;;  %v681_v4 = vpop.permute.xlu1 %680 }
 0x127   : > { %v837_v41 = vadd.f32 %v784_v10, %v709_v31  ;;  %v711_v48 = vmul.f32 %v1431_v56, %v562_v44  ;;  %v564_v50 = vpop.f32.mrb[19].mxu0  ;;  %v957_v51 = vpack.c.bf16 %v932_v46, %v930_v45 }
 0x128   : > { %v838_v53 = vadd.f32 %v784_v10, %v710_v43  ;;  %v712_v54 = vmul.f32 %v1431_v56, %v564_v50 }
 0x129   : > { %v901_v55 = vmul.f32 0.01, %v837_v41  ;;  %v839_v57 = vadd.f32 %v789_v13, %v711_v48  ;;  %978 = vmatprep.subr.bf16.mxu1 %v957_v51  ;;  %vm869_vm0 = vcmp.ge.f32.partialorder %v837_v41, 0.0 }
 0x12a   : > { %v902_v58 = vmul.f32 0.01, %v838_v53  ;;  %v840_v59 = vadd.f32 %v789_v13, %v712_v54  ;;  %979 = vmatpush1.bf16.msra.mxu1 %v956_v47  ;;  %vm870_vm1 = vcmp.ge.f32.partialorder %v838_v53, 0.0  ;;  %v809_v23 = vpop.permute.xlu1 %808 }
 0x12b   : > { %vm871_vm2 = vcmp.ge.f32.partialorder %v839_v57, 0.0  ;;  %v903_v49 = vmul.f32 0.01, %v839_v57  ;;  %v933_v2 = vsel %vm869_vm0, %v837_v41, %v901_v55 }
 0x12c   : > { %vm872_vm3 = vcmp.ge.f32.partialorder %v840_v59, 0.0  ;;  %v904_v61 = vmul.f32 0.01, %v840_v59  ;;  %v568_v62 = vpop.f32.mrb[20].mxu0  ;;  %v934_v9 = vsel %vm870_vm1, %v838_v53, %v902_v58 }
 0x12d   : > { %v713_v63 = vmul.f32 %v666_v28, %v568_v62  ;;  %v570_v1 = vpop.f32.mrb[21].mxu0  ;;  %v935_v3 = vsel %vm871_vm2, %v839_v57, %v903_v49 }
 0x12e   : > { %v714_v56 = vmul.f32 %v666_v28, %v570_v1  ;;  %v572_v8 = vpop.f32.mrb[22].mxu0  ;;  %v936_v10 = vsel %vm872_vm3, %v840_v59, %v904_v61  ;;  %v958_v5 = vpack.c.bf16 %v935_v3, %v933_v2 }
 0x12f   : > { %v841_v11 = vadd.f32 %v794_v42, %v713_v63  ;;  %v715_v12 = vmul.f32 %v671_v16, %v572_v8  ;;  %v574_v13 = vpop.f32.mrb[23].mxu0  ;;  %v959_v14 = vpack.c.bf16 %v936_v10, %v934_v9 }
 0x130   : > { %v842_v15 = vadd.f32 %v794_v42, %v714_v56  ;;  %v716_v7 = vmul.f32 %v671_v16, %v574_v13  ;;  %v691_v42 = vpop.permute.xlu1 %690 }
 0x131   : > { %v905_v6 = vmul.f32 0.01, %v841_v11  ;;  %v843_v17 = vadd.f32 %v799_v52, %v715_v12  ;;  %980 = vmatprep.subr.bf16.mxu1 %v959_v14  ;;  %vm873_vm4 = vcmp.ge.f32.partialorder %v841_v11, 0.0 }
 0x132   : > { %v906_v19 = vmul.f32 0.01, %v842_v15  ;;  %v844_v20 = vadd.f32 %v799_v52, %v716_v7  ;;  %981 = vmatpush1.bf16.msra.mxu1 %v958_v5  ;;  %vm874_vm5 = vcmp.ge.f32.partialorder %v842_v15, 0.0  ;;  %v814_v52 = vpop.permute.xlu0 %813 }
 0x133   : > { %vm875_vm6 = vcmp.ge.f32.partialorder %v843_v17, 0.0  ;;  %v907_v22 = vmul.f32 0.01, %v843_v17  ;;  %v937_v27 = vsel %vm873_vm4, %v841_v11, %v905_v6 }
 0x134   : > { %vm876_vm7 = vcmp.ge.f32.partialorder %v844_v20, 0.0  ;;  %v908_v24 = vmul.f32 0.01, %v844_v20  ;;  %v578_v0 = vpop.f32.mrb[24].mxu0  ;;  %v938_v32 = vsel %vm874_vm5, %v842_v15, %v906_v19  ;;  %v819_v62 = vpop.permute.xlu1 %818  ;;  %v949_v15 = vld [vmem:[%s1466_s4] sm:$0xf] }
 0x135   : > { %v717_v25 = vmul.f32 %v676_v60, %v578_v0  ;;  %v580_v26 = vpop.f32.mrb[25].mxu0  ;;  %v939_v28 = vsel %vm875_vm6, %v843_v17, %v907_v22 }
 0x136   : > { %v718_v29 = vmul.f32 %v676_v60, %v580_v26  ;;  %v582_v30 = vpop.f32.mrb[26].mxu0  ;;  %v940_v33 = vsel %vm876_vm7, %v844_v20, %v908_v24  ;;  %v960_v16 = vpack.c.bf16 %v939_v28, %v937_v27  ;;  %v970_v7 = vpop.permute.xlu0 %969 }
 0x137   : > { %v845_v34 = vadd.f32 %v804_v18, %v717_v25  ;;  %v719_v35 = vmul.f32 %v681_v4, %v582_v30  ;;  %v584_v36 = vpop.f32.mrb[27].mxu0  ;;  %v961_v37 = vpack.c.bf16 %v940_v33, %v938_v32 }
 0x138   : > { %v846_v31 = vadd.f32 %v804_v18, %v718_v29  ;;  %v720_v39 = vmul.f32 %v681_v4, %v584_v36  ;;  %v1017_v19 = vpop.permute.xlu1 %1016 }
 0x139   : > { %v909_v21 = vmul.f32 0.01, %v845_v34  ;;  %v847_v40 = vadd.f32 %v809_v23, %v719_v35  ;;  %982 = vmatprep.subr.bf16.mxu1 %v961_v37  ;;  %vm877_vm8 = vcmp.ge.f32.partialorder %v845_v34, 0.0 }
 0x13a   : > { %v910_v43 = vmul.f32 0.01, %v846_v31  ;;  %v848_v44 = vadd.f32 %v809_v23, %v720_v39  ;;  %983 = vmatpush1.bf16.msra.mxu1 %v960_v16  ;;  %vm878_vm9 = vcmp.ge.f32.partialorder %v846_v31, 0.0  ;;  %v1025_v0 = vpop.permute.xlu0 %1024 }
 0x13b   : > { %vm879_vm10 = vcmp.ge.f32.partialorder %v847_v40, 0.0  ;;  %v911_v45 = vmul.f32 0.01, %v847_v40  ;;  %v941_v50 = vsel %vm877_vm8, %v845_v34, %v909_v21 }
 0x13c   : > { %vm880_vm11 = vcmp.ge.f32.partialorder %v848_v44, 0.0  ;;  %v912_v46 = vmul.f32 0.01, %v848_v44  ;;  %v588_v47 = vpop.f32.mrb[28].mxu0  ;;  %v942_v55 = vsel %vm878_vm9, %v846_v31, %v910_v43 }
 0x13d   : > { %v721_v41 = vmul.f32 %v686_v38, %v588_v47  ;;  %v590_v48 = vpop.f32.mrb[29].mxu0  ;;  %v943_v51 = vsel %vm879_vm10, %v847_v40, %v911_v45 }
 0x13e   : > { %v722_v53 = vmul.f32 %v686_v38, %v590_v48  ;;  %v592_v54 = vpop.f32.mrb[30].mxu0  ;;  %v944_v57 = vsel %vm880_vm11, %v848_v44, %v912_v46  ;;  %v962_v58 = vpack.c.bf16 %v943_v51, %v941_v50 }
 0x13f   : > { %v849_v59 = vadd.f32 %v814_v52, %v721_v41  ;;  %v723_v49 = vmul.f32 %v691_v42, %v592_v54  ;;  %v594_v60 = vpop.f32.mrb[31].mxu0  ;;  %v963_v61 = vpack.c.bf16 %v944_v57, %v942_v55 }
 0x140   : > { %v850_v63 = vadd.f32 %v814_v52, %v722_v53  ;;  %v724_v1 = vmul.f32 %v691_v42, %v594_v60 }
 0x141   : > { %v913_v2 = vmul.f32 0.01, %v849_v59  ;;  %v851_v3 = vadd.f32 %v819_v62, %v723_v49  ;;  %984 = vmatprep.subr.bf16.mxu1 %v963_v61  ;;  %vm881_vm12 = vcmp.ge.f32.partialorder %v849_v59, 0.0 }
 0x142   : > { %v914_v4 = vmul.f32 0.01, %v850_v63  ;;  %v852_v56 = vadd.f32 %v819_v62, %v724_v1  ;;  %985 = vmatpush1.bf16.msra.mxu1 %v962_v58  ;;  %vm882_vm13 = vcmp.ge.f32.partialorder %v850_v63, 0.0 }
 0x143   : > { %vm883_vm14 = vcmp.ge.f32.partialorder %v851_v3, 0.0  ;;  %v915_v8 = vmul.f32 0.01, %v851_v3  ;;  %v945_v10 = vsel %vm881_vm12, %v849_v59, %v913_v2 }
 0x144   : > { %vm884_vm15 = vcmp.ge.f32.partialorder %v852_v56, 0.0  ;;  %v916_v9 = vmul.f32 0.01, %v852_v56  ;;  %v946_v11 = vsel %vm882_vm13, %v850_v63, %v914_v4 }
 0x145   : > { %v947_v5 = vsel %vm883_vm14, %v851_v3, %v915_v8 }
 0x146   : > { %v948_v12 = vsel %vm884_vm15, %v852_v56, %v916_v9  ;;  %v964_v13 = vpack.c.bf16 %v947_v5, %v945_v10 }
 0x147   : > { %v965_v14 = vpack.c.bf16 %v948_v12, %v946_v11 }
 0x149   : > { %986 = vmatprep.subr.bf16.mxu1 %v965_v14 }
 0x14a   : > { %987 = vmatpush1.bf16.msra.mxu1 %v964_v13 }
 0x14d   : > { %1005 = vmatmul.mubr.bf16.vlgmr.msra.gmra.mrb[0].mxu1 %v949_v15 }
 0x220   : > { %v1006_v6 = vpop.f32.mrb[0].mxu1 }
 0x221   : > { %v1007_v17 = vadd.f32 %v1006_v6, %v970_v7  ;;  %v1008_v18 = vpop.f32.mrb[1].mxu1 }
 0x222   : > { %v1009_v20 = vadd.f32 %v1008_v18, %v970_v7  ;;  %v1010_v22 = vpop.f32.mrb[2].mxu1 }
 0x223   : > { %v1019_v23 = vmul.f32 %v1017_v19, %v1007_v17  ;;  %v1011_v24 = vpop.f32.mrb[3].mxu1 }
 0x224   : > { %v1020_v25 = vmul.f32 %v1017_v19, %v1009_v20 }
 0x225   : > { %v1027_v26 = vadd.f32 %v1025_v0, %v1019_v23 }
 0x226   : > { %v1028_v27 = vadd.f32 %v1025_v0, %v1020_v25 }
 0x227   : > { %vm1029_vm0 = vcmp.ge.f32.partialorder %v1027_v26, 0.0  ;;  %v1031_v28 = vmul.f32 0.01, %v1027_v26 }
 0x228   : > { %vm1030_vm1 = vcmp.ge.f32.partialorder %v1028_v27, 0.0  ;;  %v1032_v29 = vmul.f32 0.01, %v1028_v27 }
 0x229   : > { %v1033_v30 = vsel %vm1029_vm0, %v1027_v26, %v1031_v28 }
 0x22a   : > { %1035 = vst [vmem:[%s322_s25] sm:$0xff] %v1033_v30  ;;  %v1034_v32 = vsel %vm1030_vm1, %v1028_v27, %v1032_v29 }
 0x22b   : > { %1036 = vst [vmem:[%s322_s25 + $0x8] sm:$0xff] %v1034_v32 }
 0x22c PF: > { %s18_s27 = sadd.s32 1, %s1191_s27  }
 0x22d   : > { %p15_p4 = scmp.ge.s32.totalorder %s18_s27, 4  }
 0x22f   :  { %17 = sbr.rel (!%p15_p4) target bundleno = 1 (0x1), region = 85 }

</bundles_post_ra>
